<compile_context>
chip_gen: v7x
topology: tpu7x:2x2x1
jax: 0.10.0
libtpu: 0.0.40
codegen_flags: <defaults>
</compile_context>

<pallas_src>
import functools

import numpy as np
import jax
import jax.numpy as jnp
from jax import lax
from jax.experimental import pallas as pl
from jax.experimental.pallas import tpu as pltpu


# ----------------------------- Pallas kernels ------------------------------

def _make_ce_kernel(num_classes, eos_coef):
    num_classes = int(num_classes)
    eos_coef = float(eos_coef)

    def _part(logits_ref, labels_ref):
        x = logits_ref[...].astype(jnp.float32)            # [N, C]
        y = labels_ref[...]                                 # [N, 1] int32
        m = jnp.max(x, axis=-1, keepdims=True)
        lse = m + jnp.log(jnp.sum(jnp.exp(x - m), axis=-1, keepdims=True))
        cls = lax.broadcasted_iota(jnp.int32, x.shape, 1)   # class ids on lanes
        hit = cls == y                                      # one-hot via compare
        picked = jnp.sum(jnp.where(hit, x, 0.0), axis=-1, keepdims=True)
        w = jnp.where(y == num_classes, eos_coef, 1.0).astype(jnp.float32)
        ce_sum = jnp.sum(w * (lse - picked))                # F.cross_entropy sum
        w_sum = jnp.sum(w)                                  # normalizer
        matched = y != num_classes
        # top-1 correct: the labeled class attains the row max
        correct = jnp.sum(jnp.where(jnp.logical_and(matched, picked >= m), 1.0, 0.0))
        n_match = jnp.sum(jnp.where(matched, 1.0, 0.0))
        return ce_sum, w_sum, correct, n_match

    def kernel(ent_l_ref, ent_y_ref, sub_l_ref, sub_y_ref,
               obj_l_ref, obj_y_ref, out_ref):
        layer = pl.program_id(0)
        e = _part(ent_l_ref, ent_y_ref)
        s = _part(sub_l_ref, sub_y_ref)
        o = _part(obj_l_ref, obj_y_ref)
        out_ref[layer, 0] = e[0] + s[0] + o[0]   # weighted CE sum (all sources)
        out_ref[layer, 1] = e[1] + s[1] + o[1]   # weight sum (normalizer)
        out_ref[layer, 2] = e[2]                 # entity top-1 correct
        out_ref[layer, 3] = e[3]                 # entity matched count
        out_ref[layer, 4] = s[2]                 # subject top-1 correct
        out_ref[layer, 5] = s[3]
        out_ref[layer, 6] = o[2]                 # object top-1 correct
        out_ref[layer, 7] = o[3]

    return kernel


@functools.lru_cache(maxsize=None)
def _build_ce_call(L, NE, NR, C, num_classes, eos_coef):
    kernel = _make_ce_kernel(num_classes, eos_coef)

    def lmap(layer):
        return (layer, 0, 0)

    in_specs = [
        pl.BlockSpec((None, NE, C), lmap),   # entity logits   [L, NE, C]
        pl.BlockSpec((None, NE, 1), lmap),   # entity labels   [L, NE, 1]
        pl.BlockSpec((None, NR, C), lmap),   # subject logits  [L, NR, C]
        pl.BlockSpec((None, NR, 1), lmap),
        pl.BlockSpec((None, NR, C), lmap),   # object logits   [L, NR, C]
        pl.BlockSpec((None, NR, 1), lmap),
    ]
    return pl.pallas_call(
        kernel,
        out_shape=jax.ShapeDtypeStruct((L, 8), jnp.float32),
        grid=(L,),
        in_specs=in_specs,
        # Whole [L, 8] SMEM output stays resident across the layer grid and is
        # indexed by pl.program_id(0) inside the kernel; revisited output =>
        # the layer axis must be "arbitrary".
        out_specs=pl.BlockSpec(memory_space=pltpu.MemorySpace.SMEM),
        compiler_params=pltpu.CompilerParams(dimension_semantics=("arbitrary",)),
    )


def fused_weighted_ce(ent_logits, ent_labels, sub_logits, sub_labels,
                      obj_logits, obj_labels, *, num_classes, eos_coef):
    """Per-layer weighted-CE sums + matched top-1 counts.

    *_logits: [L, N, C] float, *_labels: [L, N, 1] int32.
    Returns float32 [L, 8]:
      (ce_sum, weight_sum, ent_correct, ent_matched,
       sub_correct, sub_matched, obj_correct, obj_matched) per layer.
    """
    L, NE, C = ent_logits.shape
    NR = sub_logits.shape[1]
    call = _build_ce_call(int(L), int(NE), int(NR), int(C),
                          int(num_classes), float(eos_coef))
    return call(ent_logits, ent_labels, sub_logits, sub_labels,
                obj_logits, obj_labels)


def _make_box_kernel(n_valid):
    n_valid = int(n_valid)

    def kernel(src_ref, tgt_ref, out_ref):
        layer = pl.program_id(0)
        s = src_ref[...].astype(jnp.float32)     # [4, Npad]: rows = cx, cy, w, h
        t = tgt_ref[...].astype(jnp.float32)
        npad = s.shape[-1]
        valid = lax.broadcasted_iota(jnp.int32, (1, npad), 1) < n_valid
        validf = valid.astype(jnp.float32)

        l1 = jnp.sum(jnp.abs(s - t) * validf)    # masked F.l1_loss sum

        def xyxy(b):
            cx, cy, w, h = b[0:1, :], b[1:2, :], b[2:3, :], b[3:4, :]
            return cx - 0.5 * w, cy - 0.5 * h, cx + 0.5 * w, cy + 0.5 * h

        sx0, sy0, sx1, sy1 = xyxy(s)
        tx0, ty0, tx1, ty1 = xyxy(t)
        area_s = (sx1 - sx0) * (sy1 - sy0)
        area_t = (tx1 - tx0) * (ty1 - ty0)
        iw = jnp.maximum(jnp.minimum(sx1, tx1) - jnp.maximum(sx0, tx0), 0.0)
        ih = jnp.maximum(jnp.minimum(sy1, ty1) - jnp.maximum(sy0, ty0), 0.0)
        inter = iw * ih
        union = area_s + area_t - inter
        cw = jnp.maximum(sx1, tx1) - jnp.minimum(sx0, tx0)
        ch = jnp.maximum(sy1, ty1) - jnp.minimum(sy0, ty0)
        area_c = cw * ch
        # Only pad lanes get a guarded denominator (0/0 -> 0); real boxes keep
        # PyTorch box_ops' exact arithmetic (no eps).
        iou = inter / jnp.where(valid, union, 1.0)
        giou = iou - (area_c - union) / jnp.where(valid, area_c, 1.0)

        out_ref[layer, 0] = l1
        out_ref[layer, 1] = jnp.sum(jnp.where(valid, 1.0 - giou, 0.0))

    return kernel


@functools.lru_cache(maxsize=None)
def _build_box_call(L, npad, n_valid):
    kernel = _make_box_kernel(n_valid)

    def lmap(layer):
        return (layer, 0, 0)

    return pl.pallas_call(
        kernel,
        out_shape=jax.ShapeDtypeStruct((L, 2), jnp.float32),
        grid=(L,),
        in_specs=[pl.BlockSpec((None, 4, npad), lmap),
                  pl.BlockSpec((None, 4, npad), lmap)],
        out_specs=pl.BlockSpec(memory_space=pltpu.MemorySpace.SMEM),
        compiler_params=pltpu.CompilerParams(dimension_semantics=("arbitrary",)),
    )


def fused_box_losses(src_boxes_t, tgt_boxes_t, *, n_valid):
    """Per-layer L1 and (1 - GIoU) sums over matched box pairs.

    src/tgt are [L, 4, N_pad] (lane-dense).  Returns float32 [L, 2].
    """
    L, _, npad = src_boxes_t.shape
    call = _build_box_call(int(L), int(npad), int(n_valid))
    return call(src_boxes_t, tgt_boxes_t)


# ------------------------------ criterion ----------------------------------

class SetCriterion:
    """JAX/Pallas port of models/reltr.py::SetCriterion (forward semantics)."""

    def __init__(self, num_classes, matcher, weight_dict, eos_coef, losses):
        self.num_classes = num_classes
        self.matcher = matcher
        self.weight_dict = weight_dict
        self.eos_coef = eos_coef
        self.losses = losses
        # buffer kept for API parity; the CE kernel derives the per-row weight
        # from eos_coef directly (no [N, C] one-hot / weight-row inputs).
        self.empty_weight = jnp.ones((num_classes + 1,), jnp.float32).at[-1].set(eos_coef)

    @staticmethod
    def _get_src_permutation_idx(indices):
        batch_idx = np.concatenate(
            [np.full(np.asarray(src).shape, i, dtype=np.int64)
             for i, (src, _) in enumerate(indices)])
        src_idx = np.concatenate([np.asarray(src) for src, _ in indices])
        return batch_idx, src_idx

    def _build_label_arrays(self, B, Q, R, targets_np, indices):
        """Host-side (numpy) construction of the per-layer target class maps."""
        b_idx, s_idx = self._get_src_permutation_idx(indices[0])
        tco = np.concatenate(
            [targets_np[i]['labels'][np.asarray(J)]
             for i, (_, J) in enumerate(indices[0])]).astype(np.int32)
        ent = np.full((B, Q), self.num_classes, np.int32)
        ent[b_idx, s_idx] = tco

        rb_idx, rs_idx = self._get_src_permutation_idx(indices[1])
        t_sub = np.concatenate(
            [targets_np[i]['labels'][targets_np[i]['rel_annotations'][np.asarray(J), 0]]
             for i, (_, J) in enumerate(indices[1])]).astype(np.int32)
        t_obj = np.concatenate(
            [targets_np[i]['labels'][targets_np[i]['rel_annotations'][np.asarray(J), 1]]
             for i, (_, J) in enumerate(indices[1])]).astype(np.int32)
        sub = np.full((B, R), self.num_classes, np.int32)
        obj = np.full((B, R), self.num_classes, np.int32)
        sub[rb_idx, rs_idx] = t_sub
        obj[rb_idx, rs_idx] = t_obj
        return ent, sub, obj

    def _gather_boxes(self, outputs_l, targets_np, indices):
        b_idx, s_idx = self._get_src_permutation_idx(indices[0])
        rb_idx, rs_idx = self._get_src_permutation_idx(indices[1])
        src = jnp.concatenate(
            (outputs_l['pred_boxes'][b_idx, s_idx],
             outputs_l['sub_boxes'][rb_idx, rs_idx],
             outputs_l['obj_boxes'][rb_idx, rs_idx]), axis=0)            # [N, 4]
        tgt = np.concatenate(
            [np.concatenate([targets_np[i]['boxes'][np.asarray(J)]
                             for i, (_, J) in enumerate(indices[0])], axis=0),
             np.concatenate([targets_np[i]['boxes'][targets_np[i]['rel_annotations'][np.asarray(J), 0]]
                             for i, (_, J) in enumerate(indices[1])], axis=0),
             np.concatenate([targets_np[i]['boxes'][targets_np[i]['rel_annotations'][np.asarray(J), 1]]
                             for i, (_, J) in enumerate(indices[1])], axis=0)],
            axis=0).astype(np.float32)                                    # [N, 4]
        return src, tgt

    def forward(self, outputs, targets):
        unknown = [l for l in self.losses if l not in ('labels', 'boxes')]
        assert not unknown, f'do you really want to compute {unknown} loss?'

        outputs_without_aux = {k: v for k, v in outputs.items() if k != 'aux_outputs'}
        indices = self.matcher(outputs_without_aux, targets)
        self.indices = indices

        aux_outputs = outputs.get('aux_outputs', [])
        layer_outputs = [outputs_without_aux] + list(aux_outputs)
        # TODO(synk): Hungarian matching (scipy linear_sum_assignment) has no clean
        # Pallas equivalent; the matcher runs on host per layer, as in PyTorch.
        layer_indices = [indices] + [self.matcher(a, targets) for a in aux_outputs]
        L = len(layer_outputs)

        targets_np = [{k: np.asarray(v) for k, v in t.items()} for t in targets]

        num_boxes = sum(int(t['labels'].shape[0]) + int(t['rel_annotations'].shape[0]) * 2
                        for t in targets_np)
        # single host: no torch.distributed all_reduce / world_size division
        num_boxes = max(float(num_boxes), 1.0)

        losses = {}

        def layer_key(name, li):
            return name if li == 0 else f'{name}_{li - 1}'

        if 'labels' in self.losses:
            B, Q, C = layer_outputs[0]['pred_logits'].shape
            R = layer_outputs[0]['sub_logits'].shape[1]
            ent_lab, sub_lab, obj_lab = [], [], []
            for li_idx in layer_indices:
                e, s, o = self._build_label_arrays(B, Q, R, targets_np, li_idx)
                ent_lab.append(e)
                sub_lab.append(s)
                obj_lab.append(o)
            ent_labels = jnp.asarray(np.stack(ent_lab).reshape(L, B * Q, 1))
            sub_labels = jnp.asarray(np.stack(sub_lab).reshape(L, B * R, 1))
            obj_labels = jnp.asarray(np.stack(obj_lab).reshape(L, B * R, 1))
            ent_logits = jnp.stack([lo['pred_logits'] for lo in layer_outputs]).reshape(L, B * Q, C)
            sub_logits = jnp.stack([lo['sub_logits'] for lo in layer_outputs]).reshape(L, B * R, C)
            obj_logits = jnp.stack([lo['obj_logits'] for lo in layer_outputs]).reshape(L, B * R, C)

            ce = fused_weighted_ce(ent_logits, ent_labels, sub_logits, sub_labels,
                                   obj_logits, obj_labels,
                                   num_classes=self.num_classes, eos_coef=self.eos_coef)
            loss_ce_all = ce[:, 0] / ce[:, 1]
            for li in range(L):
                losses[layer_key('loss_ce', li)] = loss_ce_all[li]

            # logging metrics only for the main head (log=True in PyTorch)
            def top1_error(correct, total):
                acc = jnp.where(total > 0, 100.0 * correct / jnp.maximum(total, 1.0), 0.0)
                return 100.0 - acc

            losses['class_error'] = top1_error(ce[0, 2], ce[0, 3])
            losses['sub_error'] = top1_error(ce[0, 4], ce[0, 5])
            losses['obj_error'] = top1_error(ce[0, 6], ce[0, 7])

        if 'boxes' in self.losses:
            srcs, tgts = [], []
            for lo, li_idx in zip(layer_outputs, layer_indices):
                s, t = self._gather_boxes(lo, targets_np, li_idx)
                srcs.append(s)
                tgts.append(t)
            n = srcs[0].shape[0]
            assert all(s.shape[0] == n for s in srcs)
            n_pad = max(128, ((n + 127) // 128) * 128)      # lane-dense padding
            src_t = jnp.transpose(jnp.stack(srcs), (0, 2, 1))          # [L, 4, N]
            src_t = jnp.pad(src_t, ((0, 0), (0, 0), (0, n_pad - n)))
            tgt_np = np.transpose(np.stack(tgts), (0, 2, 1))
            tgt_t = jnp.asarray(np.pad(tgt_np, ((0, 0), (0, 0), (0, n_pad - n))))

            box = fused_box_losses(src_t, tgt_t, n_valid=n) / jnp.float32(num_boxes)
            for li in range(L):
                losses[layer_key('loss_bbox', li)] = box[li, 0]
                losses[layer_key('loss_giou', li)] = box[li, 1]

        return losses

    __call__ = forward


# --------------------------------- main -------------------------------------

def _rand_boxes(key, shape_prefix):
    k1, k2 = jax.random.split(key)
    cxy = jax.random.uniform(k1, shape_prefix + (2,), minval=0.25, maxval=0.75)
    wh = jax.random.uniform(k2, shape_prefix + (2,), minval=0.10, maxval=0.40)
    return jnp.concatenate([cxy, wh], axis=-1).astype(jnp.float32)


def stub_matcher(outputs, targets):
    # TODO(synk): Hungarian matching (scipy linear_sum_assignment) has no clean Pallas
    # equivalent; deterministic stub indices stand in for the matcher output.
    entity = [(np.array([1, 3, 5, 7]), np.array([0, 2, 1, 3])),
              (np.array([0, 2, 4, 6, 7]), np.array([4, 1, 0, 3, 2]))]
    rel = [(np.array([0, 2, 4]), np.array([1, 0, 2])),
           (np.array([1, 5]), np.array([0, 1]))]
    return entity, rel


if __name__ == "__main__":
    B, Q, R, NUM_CLASSES, NUM_AUX = 2, 8, 8, 31, 2
    C = NUM_CLASSES + 1

    key = jax.random.PRNGKey(0)
    ks = jax.random.split(key, 4 + NUM_AUX)

    def make_head(k):
        kk = jax.random.split(k, 6)
        return {
            'pred_logits': jax.random.normal(kk[0], (B, Q, C), jnp.float32),
            'sub_logits':  jax.random.normal(kk[1], (B, R, C), jnp.float32),
            'obj_logits':  jax.random.normal(kk[2], (B, R, C), jnp.float32),
            'pred_boxes':  _rand_boxes(kk[3], (B, Q)),
            'sub_boxes':   _rand_boxes(kk[4], (B, R)),
            'obj_boxes':   _rand_boxes(kk[5], (B, R)),
        }

    outputs = make_head(ks[0])
    outputs['aux_outputs'] = [make_head(ks[1 + i]) for i in range(NUM_AUX)]

    tk = jax.random.split(ks[-1], 4)
    targets = [
        {'labels': jax.random.randint(tk[0], (4,), 0, NUM_CLASSES, jnp.int32),
         'boxes': _rand_boxes(tk[1], (4,)),
         'rel_annotations': jnp.array([[0, 1, 3], [2, 3, 5], [1, 0, 7]], jnp.int32)},
        {'labels': jax.random.randint(tk[2], (5,), 0, NUM_CLASSES, jnp.int32),
         'boxes': _rand_boxes(tk[3], (5,)),
         'rel_annotations': jnp.array([[4, 2, 1], [0, 3, 6]], jnp.int32)},
    ]

    criterion = SetCriterion(
        num_classes=NUM_CLASSES,
        matcher=stub_matcher,
        weight_dict={'loss_ce': 1.0, 'loss_bbox': 5.0, 'loss_giou': 2.0},
        eos_coef=0.1,
        losses=['labels', 'boxes'],
    )

    losses = criterion(outputs, targets)
    losses = {k: jax.block_until_ready(v) for k, v in losses.items()}

    expected_keys = {'loss_ce', 'class_error', 'sub_error', 'obj_error',
                     'loss_bbox', 'loss_giou'}
    for i in range(NUM_AUX):
        expected_keys |= {f'loss_ce_{i}', f'loss_bbox_{i}', f'loss_giou_{i}'}
    assert expected_keys.issubset(losses.keys()), sorted(losses.keys())
    for k, v in losses.items():
        assert np.isfinite(np.asarray(v)).all(), f"non-finite loss {k}"
    print("KERNEL_OK")
</pallas_src>

<mosaic_0001>
module attributes {stable_mosaic.version = 11 : i64} {
  func.func @kernel(%arg0: i32, %arg1: memref<1x16x32xf32, #tpu.memory_space<vmem>>, %arg2: memref<1x16x1xi32, #tpu.memory_space<vmem>>, %arg3: memref<1x16x32xf32, #tpu.memory_space<vmem>>, %arg4: memref<1x16x1xi32, #tpu.memory_space<vmem>>, %arg5: memref<1x16x32xf32, #tpu.memory_space<vmem>>, %arg6: memref<1x16x1xi32, #tpu.memory_space<vmem>>, %arg7: memref<3x8xf32, #tpu.memory_space<smem>>) attributes {dimension_semantics = [#tpu.dimension_semantics<arbitrary>], iteration_bounds = array<i64: 3>, scalar_prefetch = 0 : i64, scratch_operands = 0 : i64, tpu.core_type = #tpu.core_type<tc>, window_params = [{transform_indices = @transform_0, window_bounds = array<i64: 1, 16, 32>}, {transform_indices = @transform_1, window_bounds = array<i64: 1, 16, 1>}, {transform_indices = @transform_2, window_bounds = array<i64: 1, 16, 32>}, {transform_indices = @transform_3, window_bounds = array<i64: 1, 16, 1>}, {transform_indices = @transform_4, window_bounds = array<i64: 1, 16, 32>}, {transform_indices = @transform_5, window_bounds = array<i64: 1, 16, 1>}, {transform_indices = @transform_6, window_bounds = array<i64: 3, 8>}]} {
    %c0 = arith.constant 0 : index
    %c0_0 = arith.constant 0 : index
    %c0_1 = arith.constant 0 : index
    %0 = vector.load %arg1[%c0, %c0_0, %c0_1] : memref<1x16x32xf32, #tpu.memory_space<vmem>>, vector<1x16x32xf32>
    %1 = vector.shape_cast %0 : vector<1x16x32xf32> to vector<16x32xf32>
    %c0_2 = arith.constant 0 : index
    %c0_3 = arith.constant 0 : index
    %c0_4 = arith.constant 0 : index
    %2 = vector.load %arg2[%c0_2, %c0_3, %c0_4] : memref<1x16x1xi32, #tpu.memory_space<vmem>>, vector<1x16x1xi32>
    %3 = vector.shape_cast %2 : vector<1x16x1xi32> to vector<16x1xi32>
    %cst = arith.constant dense<0xFF800000> : vector<16xf32>
    %4 = vector.multi_reduction <maximumf>, %1, %cst [1] : vector<16x32xf32> to vector<16xf32>
    %5 = vector.shape_cast %4 : vector<16xf32> to vector<16x1xf32>
    %6 = vector.broadcast %5 : vector<16x1xf32> to vector<16x32xf32>
    %7 = arith.subf %1, %6 : vector<16x32xf32>
    %8 = math.exp %7 : vector<16x32xf32>
    %cst_5 = arith.constant dense<0.000000e+00> : vector<16xf32>
    %9 = vector.multi_reduction <add>, %8, %cst_5 [1] : vector<16x32xf32> to vector<16xf32>
    %10 = vector.shape_cast %9 : vector<16xf32> to vector<16x1xf32>
    %11 = math.log %10 : vector<16x1xf32>
    %12 = arith.addf %5, %11 : vector<16x1xf32>
    %13 = tpu.iota {dimensions = array<i32: 1>} : vector<16x32xi32>
    %14 = vector.broadcast %3 : vector<16x1xi32> to vector<16x32xi32>
    %15 = arith.cmpi eq, %13, %14 : vector<16x32xi32>
    %cst_6 = arith.constant 0.000000e+00 : f32
    %16 = vector.broadcast %cst_6 : f32 to vector<16x32xf32>
    %17 = arith.select %15, %1, %16 : vector<16x32xi1>, vector<16x32xf32>
    %cst_7 = arith.constant dense<0.000000e+00> : vector<16xf32>
    %18 = vector.multi_reduction <add>, %17, %cst_7 [1] : vector<16x32xf32> to vector<16xf32>
    %19 = vector.shape_cast %18 : vector<16xf32> to vector<16x1xf32>
    %c31_i32 = arith.constant 31 : i32
    %20 = vector.broadcast %c31_i32 : i32 to vector<16x1xi32>
    %21 = arith.cmpi eq, %3, %20 : vector<16x1xi32>
    %cst_8 = arith.constant 1.000000e-01 : f32
    %cst_9 = arith.constant 1.000000e+00 : f32
    %22 = vector.broadcast %cst_8 : f32 to vector<16x1xf32>
    %23 = vector.broadcast %cst_9 : f32 to vector<16x1xf32>
    %24 = arith.select %21, %22, %23 : vector<16x1xi1>, vector<16x1xf32>
    %25 = arith.subf %12, %19 : vector<16x1xf32>
    %26 = arith.mulf %24, %25 : vector<16x1xf32>
    %27 = vector.shape_cast %26 : vector<16x1xf32> to vector<1x16x1xf32>
    %cst_10 = arith.constant dense<0.000000e+00> : vector<1xf32>
    %28 = vector.multi_reduction <add>, %27, %cst_10 [1, 2] : vector<1x16x1xf32> to vector<1xf32>
    %29 = vector.shape_cast %28 : vector<1xf32> to vector<1x1x1xf32>
    %30 = vector.extract %29[0, 0, 0] : f32 from vector<1x1x1xf32>
    %31 = vector.shape_cast %24 : vector<16x1xf32> to vector<1x16x1xf32>
    %cst_11 = arith.constant dense<0.000000e+00> : vector<1xf32>
    %32 = vector.multi_reduction <add>, %31, %cst_11 [1, 2] : vector<1x16x1xf32> to vector<1xf32>
    %33 = vector.shape_cast %32 : vector<1xf32> to vector<1x1x1xf32>
    %34 = vector.extract %33[0, 0, 0] : f32 from vector<1x1x1xf32>
    %c31_i32_12 = arith.constant 31 : i32
    %35 = vector.broadcast %c31_i32_12 : i32 to vector<16x1xi32>
    %36 = arith.cmpi ne, %3, %35 : vector<16x1xi32>
    %37 = arith.cmpf oge, %19, %5 : vector<16x1xf32>
    %38 = arith.andi %36, %37 : vector<16x1xi1>
    %cst_13 = arith.constant 1.000000e+00 : f32
    %cst_14 = arith.constant 0.000000e+00 : f32
    %39 = vector.broadcast %cst_13 : f32 to vector<16x1xf32>
    %40 = vector.broadcast %cst_14 : f32 to vector<16x1xf32>
    %41 = arith.select %38, %39, %40 : vector<16x1xi1>, vector<16x1xf32>
    %42 = vector.shape_cast %41 : vector<16x1xf32> to vector<1x16x1xf32>
    %cst_15 = arith.constant dense<0.000000e+00> : vector<1xf32>
    %43 = vector.multi_reduction <add>, %42, %cst_15 [1, 2] : vector<1x16x1xf32> to vector<1xf32>
    %44 = vector.shape_cast %43 : vector<1xf32> to vector<1x1x1xf32>
    %45 = vector.extract %44[0, 0, 0] : f32 from vector<1x1x1xf32>
    %cst_16 = arith.constant 1.000000e+00 : f32
    %cst_17 = arith.constant 0.000000e+00 : f32
    %46 = vector.broadcast %cst_16 : f32 to vector<16x1xf32>
    %47 = vector.broadcast %cst_17 : f32 to vector<16x1xf32>
    %48 = arith.select %36, %46, %47 : vector<16x1xi1>, vector<16x1xf32>
    %49 = vector.shape_cast %48 : vector<16x1xf32> to vector<1x16x1xf32>
    %cst_18 = arith.constant dense<0.000000e+00> : vector<1xf32>
    %50 = vector.multi_reduction <add>, %49, %cst_18 [1, 2] : vector<1x16x1xf32> to vector<1xf32>
    %51 = vector.shape_cast %50 : vector<1xf32> to vector<1x1x1xf32>
    %52 = vector.extract %51[0, 0, 0] : f32 from vector<1x1x1xf32>
    %c0_19 = arith.constant 0 : index
    %c0_20 = arith.constant 0 : index
    %c0_21 = arith.constant 0 : index
    %53 = vector.load %arg3[%c0_19, %c0_20, %c0_21] : memref<1x16x32xf32, #tpu.memory_space<vmem>>, vector<1x16x32xf32>
    %54 = vector.shape_cast %53 : vector<1x16x32xf32> to vector<16x32xf32>
    %c0_22 = arith.constant 0 : index
    %c0_23 = arith.constant 0 : index
    %c0_24 = arith.constant 0 : index
    %55 = vector.load %arg4[%c0_22, %c0_23, %c0_24] : memref<1x16x1xi32, #tpu.memory_space<vmem>>, vector<1x16x1xi32>
    %56 = vector.shape_cast %55 : vector<1x16x1xi32> to vector<16x1xi32>
    %cst_25 = arith.constant dense<0xFF800000> : vector<16xf32>
    %57 = vector.multi_reduction <maximumf>, %54, %cst_25 [1] : vector<16x32xf32> to vector<16xf32>
    %58 = vector.shape_cast %57 : vector<16xf32> to vector<16x1xf32>
    %59 = vector.broadcast %58 : vector<16x1xf32> to vector<16x32xf32>
    %60 = arith.subf %54, %59 : vector<16x32xf32>
    %61 = math.exp %60 : vector<16x32xf32>
    %cst_26 = arith.constant dense<0.000000e+00> : vector<16xf32>
    %62 = vector.multi_reduction <add>, %61, %cst_26 [1] : vector<16x32xf32> to vector<16xf32>
    %63 = vector.shape_cast %62 : vector<16xf32> to vector<16x1xf32>
    %64 = math.log %63 : vector<16x1xf32>
    %65 = arith.addf %58, %64 : vector<16x1xf32>
    %66 = tpu.iota {dimensions = array<i32: 1>} : vector<16x32xi32>
    %67 = vector.broadcast %56 : vector<16x1xi32> to vector<16x32xi32>
    %68 = arith.cmpi eq, %66, %67 : vector<16x32xi32>
    %cst_27 = arith.constant 0.000000e+00 : f32
    %69 = vector.broadcast %cst_27 : f32 to vector<16x32xf32>
    %70 = arith.select %68, %54, %69 : vector<16x32xi1>, vector<16x32xf32>
    %cst_28 = arith.constant dense<0.000000e+00> : vector<16xf32>
    %71 = vector.multi_reduction <add>, %70, %cst_28 [1] : vector<16x32xf32> to vector<16xf32>
    %72 = vector.shape_cast %71 : vector<16xf32> to vector<16x1xf32>
    %c31_i32_29 = arith.constant 31 : i32
    %73 = vector.broadcast %c31_i32_29 : i32 to vector<16x1xi32>
    %74 = arith.cmpi eq, %56, %73 : vector<16x1xi32>
    %cst_30 = arith.constant 1.000000e-01 : f32
    %cst_31 = arith.constant 1.000000e+00 : f32
    %75 = vector.broadcast %cst_30 : f32 to vector<16x1xf32>
    %76 = vector.broadcast %cst_31 : f32 to vector<16x1xf32>
    %77 = arith.select %74, %75, %76 : vector<16x1xi1>, vector<16x1xf32>
    %78 = arith.subf %65, %72 : vector<16x1xf32>
    %79 = arith.mulf %77, %78 : vector<16x1xf32>
    %80 = vector.shape_cast %79 : vector<16x1xf32> to vector<1x16x1xf32>
    %cst_32 = arith.constant dense<0.000000e+00> : vector<1xf32>
    %81 = vector.multi_reduction <add>, %80, %cst_32 [1, 2] : vector<1x16x1xf32> to vector<1xf32>
    %82 = vector.shape_cast %81 : vector<1xf32> to vector<1x1x1xf32>
    %83 = vector.extract %82[0, 0, 0] : f32 from vector<1x1x1xf32>
    %84 = vector.shape_cast %77 : vector<16x1xf32> to vector<1x16x1xf32>
    %cst_33 = arith.constant dense<0.000000e+00> : vector<1xf32>
    %85 = vector.multi_reduction <add>, %84, %cst_33 [1, 2] : vector<1x16x1xf32> to vector<1xf32>
    %86 = vector.shape_cast %85 : vector<1xf32> to vector<1x1x1xf32>
    %87 = vector.extract %86[0, 0, 0] : f32 from vector<1x1x1xf32>
    %c31_i32_34 = arith.constant 31 : i32
    %88 = vector.broadcast %c31_i32_34 : i32 to vector<16x1xi32>
    %89 = arith.cmpi ne, %56, %88 : vector<16x1xi32>
    %90 = arith.cmpf oge, %72, %58 : vector<16x1xf32>
    %91 = arith.andi %89, %90 : vector<16x1xi1>
    %cst_35 = arith.constant 1.000000e+00 : f32
    %cst_36 = arith.constant 0.000000e+00 : f32
    %92 = vector.broadcast %cst_35 : f32 to vector<16x1xf32>
    %93 = vector.broadcast %cst_36 : f32 to vector<16x1xf32>
    %94 = arith.select %91, %92, %93 : vector<16x1xi1>, vector<16x1xf32>
    %95 = vector.shape_cast %94 : vector<16x1xf32> to vector<1x16x1xf32>
    %cst_37 = arith.constant dense<0.000000e+00> : vector<1xf32>
    %96 = vector.multi_reduction <add>, %95, %cst_37 [1, 2] : vector<1x16x1xf32> to vector<1xf32>
    %97 = vector.shape_cast %96 : vector<1xf32> to vector<1x1x1xf32>
    %98 = vector.extract %97[0, 0, 0] : f32 from vector<1x1x1xf32>
    %cst_38 = arith.constant 1.000000e+00 : f32
    %cst_39 = arith.constant 0.000000e+00 : f32
    %99 = vector.broadcast %cst_38 : f32 to vector<16x1xf32>
    %100 = vector.broadcast %cst_39 : f32 to vector<16x1xf32>
    %101 = arith.select %89, %99, %100 : vector<16x1xi1>, vector<16x1xf32>
    %102 = vector.shape_cast %101 : vector<16x1xf32> to vector<1x16x1xf32>
    %cst_40 = arith.constant dense<0.000000e+00> : vector<1xf32>
    %103 = vector.multi_reduction <add>, %102, %cst_40 [1, 2] : vector<1x16x1xf32> to vector<1xf32>
    %104 = vector.shape_cast %103 : vector<1xf32> to vector<1x1x1xf32>
    %105 = vector.extract %104[0, 0, 0] : f32 from vector<1x1x1xf32>
    %c0_41 = arith.constant 0 : index
    %c0_42 = arith.constant 0 : index
    %c0_43 = arith.constant 0 : index
    %106 = vector.load %arg5[%c0_41, %c0_42, %c0_43] : memref<1x16x32xf32, #tpu.memory_space<vmem>>, vector<1x16x32xf32>
    %107 = vector.shape_cast %106 : vector<1x16x32xf32> to vector<16x32xf32>
    %c0_44 = arith.constant 0 : index
    %c0_45 = arith.constant 0 : index
    %c0_46 = arith.constant 0 : index
    %108 = vector.load %arg6[%c0_44, %c0_45, %c0_46] : memref<1x16x1xi32, #tpu.memory_space<vmem>>, vector<1x16x1xi32>
    %109 = vector.shape_cast %108 : vector<1x16x1xi32> to vector<16x1xi32>
    %cst_47 = arith.constant dense<0xFF800000> : vector<16xf32>
    %110 = vector.multi_reduction <maximumf>, %107, %cst_47 [1] : vector<16x32xf32> to vector<16xf32>
    %111 = vector.shape_cast %110 : vector<16xf32> to vector<16x1xf32>
    %112 = vector.broadcast %111 : vector<16x1xf32> to vector<16x32xf32>
    %113 = arith.subf %107, %112 : vector<16x32xf32>
    %114 = math.exp %113 : vector<16x32xf32>
    %cst_48 = arith.constant dense<0.000000e+00> : vector<16xf32>
    %115 = vector.multi_reduction <add>, %114, %cst_48 [1] : vector<16x32xf32> to vector<16xf32>
    %116 = vector.shape_cast %115 : vector<16xf32> to vector<16x1xf32>
    %117 = math.log %116 : vector<16x1xf32>
    %118 = arith.addf %111, %117 : vector<16x1xf32>
    %119 = tpu.iota {dimensions = array<i32: 1>} : vector<16x32xi32>
    %120 = vector.broadcast %109 : vector<16x1xi32> to vector<16x32xi32>
    %121 = arith.cmpi eq, %119, %120 : vector<16x32xi32>
    %cst_49 = arith.constant 0.000000e+00 : f32
    %122 = vector.broadcast %cst_49 : f32 to vector<16x32xf32>
    %123 = arith.select %121, %107, %122 : vector<16x32xi1>, vector<16x32xf32>
    %cst_50 = arith.constant dense<0.000000e+00> : vector<16xf32>
    %124 = vector.multi_reduction <add>, %123, %cst_50 [1] : vector<16x32xf32> to vector<16xf32>
    %125 = vector.shape_cast %124 : vector<16xf32> to vector<16x1xf32>
    %c31_i32_51 = arith.constant 31 : i32
    %126 = vector.broadcast %c31_i32_51 : i32 to vector<16x1xi32>
    %127 = arith.cmpi eq, %109, %126 : vector<16x1xi32>
    %cst_52 = arith.constant 1.000000e-01 : f32
    %cst_53 = arith.constant 1.000000e+00 : f32
    %128 = vector.broadcast %cst_52 : f32 to vector<16x1xf32>
    %129 = vector.broadcast %cst_53 : f32 to vector<16x1xf32>
    %130 = arith.select %127, %128, %129 : vector<16x1xi1>, vector<16x1xf32>
    %131 = arith.subf %118, %125 : vector<16x1xf32>
    %132 = arith.mulf %130, %131 : vector<16x1xf32>
    %133 = vector.shape_cast %132 : vector<16x1xf32> to vector<1x16x1xf32>
    %cst_54 = arith.constant dense<0.000000e+00> : vector<1xf32>
    %134 = vector.multi_reduction <add>, %133, %cst_54 [1, 2] : vector<1x16x1xf32> to vector<1xf32>
    %135 = vector.shape_cast %134 : vector<1xf32> to vector<1x1x1xf32>
    %136 = vector.extract %135[0, 0, 0] : f32 from vector<1x1x1xf32>
    %137 = vector.shape_cast %130 : vector<16x1xf32> to vector<1x16x1xf32>
    %cst_55 = arith.constant dense<0.000000e+00> : vector<1xf32>
    %138 = vector.multi_reduction <add>, %137, %cst_55 [1, 2] : vector<1x16x1xf32> to vector<1xf32>
    %139 = vector.shape_cast %138 : vector<1xf32> to vector<1x1x1xf32>
    %140 = vector.extract %139[0, 0, 0] : f32 from vector<1x1x1xf32>
    %c31_i32_56 = arith.constant 31 : i32
    %141 = vector.broadcast %c31_i32_56 : i32 to vector<16x1xi32>
    %142 = arith.cmpi ne, %109, %141 : vector<16x1xi32>
    %143 = arith.cmpf oge, %125, %111 : vector<16x1xf32>
    %144 = arith.andi %142, %143 : vector<16x1xi1>
    %cst_57 = arith.constant 1.000000e+00 : f32
    %cst_58 = arith.constant 0.000000e+00 : f32
    %145 = vector.broadcast %cst_57 : f32 to vector<16x1xf32>
    %146 = vector.broadcast %cst_58 : f32 to vector<16x1xf32>
    %147 = arith.select %144, %145, %146 : vector<16x1xi1>, vector<16x1xf32>
    %148 = vector.shape_cast %147 : vector<16x1xf32> to vector<1x16x1xf32>
    %cst_59 = arith.constant dense<0.000000e+00> : vector<1xf32>
    %149 = vector.multi_reduction <add>, %148, %cst_59 [1, 2] : vector<1x16x1xf32> to vector<1xf32>
    %150 = vector.shape_cast %149 : vector<1xf32> to vector<1x1x1xf32>
    %151 = vector.extract %150[0, 0, 0] : f32 from vector<1x1x1xf32>
    %cst_60 = arith.constant 1.000000e+00 : f32
    %cst_61 = arith.constant 0.000000e+00 : f32
    %152 = vector.broadcast %cst_60 : f32 to vector<16x1xf32>
    %153 = vector.broadcast %cst_61 : f32 to vector<16x1xf32>
    %154 = arith.select %142, %152, %153 : vector<16x1xi1>, vector<16x1xf32>
    %155 = vector.shape_cast %154 : vector<16x1xf32> to vector<1x16x1xf32>
    %cst_62 = arith.constant dense<0.000000e+00> : vector<1xf32>
    %156 = vector.multi_reduction <add>, %155, %cst_62 [1, 2] : vector<1x16x1xf32> to vector<1xf32>
    %157 = vector.shape_cast %156 : vector<1xf32> to vector<1x1x1xf32>
    %158 = vector.extract %157[0, 0, 0] : f32 from vector<1x1x1xf32>
    %159 = arith.addf %30, %83 : f32
    %160 = arith.addf %159, %136 : f32
    %161 = arith.index_cast %arg0 : i32 to index
    %c0_63 = arith.constant 0 : index
    %162 = memref.load %arg7[%161, %c0_63] : memref<3x8xf32, #tpu.memory_space<smem>>
    memref.store %160, %arg7[%161, %c0_63] : memref<3x8xf32, #tpu.memory_space<smem>>
    %163 = arith.addf %34, %87 : f32
    %164 = arith.addf %163, %140 : f32
    %165 = arith.index_cast %arg0 : i32 to index
    %c1 = arith.constant 1 : index
    %166 = memref.load %arg7[%165, %c1] : memref<3x8xf32, #tpu.memory_space<smem>>
    memref.store %164, %arg7[%165, %c1] : memref<3x8xf32, #tpu.memory_space<smem>>
    %167 = arith.index_cast %arg0 : i32 to index
    %c2 = arith.constant 2 : index
    %168 = memref.load %arg7[%167, %c2] : memref<3x8xf32, #tpu.memory_space<smem>>
    memref.store %45, %arg7[%167, %c2] : memref<3x8xf32, #tpu.memory_space<smem>>
    %169 = arith.index_cast %arg0 : i32 to index
    %c3 = arith.constant 3 : index
    %170 = memref.load %arg7[%169, %c3] : memref<3x8xf32, #tpu.memory_space<smem>>
    memref.store %52, %arg7[%169, %c3] : memref<3x8xf32, #tpu.memory_space<smem>>
    %171 = arith.index_cast %arg0 : i32 to index
    %c4 = arith.constant 4 : index
    %172 = memref.load %arg7[%171, %c4] : memref<3x8xf32, #tpu.memory_space<smem>>
    memref.store %98, %arg7[%171, %c4] : memref<3x8xf32, #tpu.memory_space<smem>>
    %173 = arith.index_cast %arg0 : i32 to index
    %c5 = arith.constant 5 : index
    %174 = memref.load %arg7[%173, %c5] : memref<3x8xf32, #tpu.memory_space<smem>>
    memref.store %105, %arg7[%173, %c5] : memref<3x8xf32, #tpu.memory_space<smem>>
    %175 = arith.index_cast %arg0 : i32 to index
    %c6 = arith.constant 6 : index
    %176 = memref.load %arg7[%175, %c6] : memref<3x8xf32, #tpu.memory_space<smem>>
    memref.store %151, %arg7[%175, %c6] : memref<3x8xf32, #tpu.memory_space<smem>>
    %177 = arith.index_cast %arg0 : i32 to index
    %c7 = arith.constant 7 : index
    %178 = memref.load %arg7[%177, %c7] : memref<3x8xf32, #tpu.memory_space<smem>>
    memref.store %158, %arg7[%177, %c7] : memref<3x8xf32, #tpu.memory_space<smem>>
    return
  }
  func.func @transform_0(%arg0: i32) -> (i32, i32, i32) {
    %c0_i32 = arith.constant 0 : i32
    %c0_i32_0 = arith.constant 0 : i32
    %c0_i32_1 = arith.constant 0 : i32
    return %arg0, %c0_i32, %c0_i32_0 : i32, i32, i32
  }
  func.func @transform_1(%arg0: i32) -> (i32, i32, i32) {
    %c0_i32 = arith.constant 0 : i32
    %c0_i32_0 = arith.constant 0 : i32
    %c0_i32_1 = arith.constant 0 : i32
    return %arg0, %c0_i32, %c0_i32_0 : i32, i32, i32
  }
  func.func @transform_2(%arg0: i32) -> (i32, i32, i32) {
    %c0_i32 = arith.constant 0 : i32
    %c0_i32_0 = arith.constant 0 : i32
    %c0_i32_1 = arith.constant 0 : i32
    return %arg0, %c0_i32, %c0_i32_0 : i32, i32, i32
  }
  func.func @transform_3(%arg0: i32) -> (i32, i32, i32) {
    %c0_i32 = arith.constant 0 : i32
    %c0_i32_0 = arith.constant 0 : i32
    %c0_i32_1 = arith.constant 0 : i32
    return %arg0, %c0_i32, %c0_i32_0 : i32, i32, i32
  }
  func.func @transform_4(%arg0: i32) -> (i32, i32, i32) {
    %c0_i32 = arith.constant 0 : i32
    %c0_i32_0 = arith.constant 0 : i32
    %c0_i32_1 = arith.constant 0 : i32
    return %arg0, %c0_i32, %c0_i32_0 : i32, i32, i32
  }
  func.func @transform_5(%arg0: i32) -> (i32, i32, i32) {
    %c0_i32 = arith.constant 0 : i32
    %c0_i32_0 = arith.constant 0 : i32
    %c0_i32_1 = arith.constant 0 : i32
    return %arg0, %c0_i32, %c0_i32_0 : i32, i32, i32
  }
  func.func @transform_6(%arg0: i32) -> (i32, i32) {
    %c0_i32 = arith.constant 0 : i32
    %c0_i32_0 = arith.constant 0 : i32
    %c0_i32_1 = arith.constant 0 : i32
    return %c0_i32, %c0_i32_0 : i32, i32
  }
}

</mosaic_0001>

<bundles_post_ra>
// kernel: tpu_custom_call.1
= control target key start
LH: loop header
LB: loop body
LE: loop exit
PB: predicated region body
PF: predicated region fallthrough
CT: control target
= control target key end

     0   :  { %11 = vsyncpa [#allocation3], 0  ;;  %s993_s21 = smov 0   ;;  %s1258_s0 = inlined_call_operand.vmem [shape: f32[3,16,32], index: 0, kind: input, shape index: {}]   ;;  %s1259_s1 = inlined_call_operand.vmem [shape: s32[3,16,1], index: 1, kind: input, shape index: {}]   ;;  %s1260_s2 = inlined_call_operand.vmem [shape: f32[3,16,32], index: 2, kind: input, shape index: {}]   ;;  %s1261_s3 = inlined_call_operand.vmem [shape: s32[3,16,1], index: 3, kind: input, shape index: {}]   ;;  %s1262_s4 = inlined_call_operand.vmem [shape: f32[3,16,32], index: 4, kind: input, shape index: {}]   ;;  %s1263_s5 = inlined_call_operand.vmem [shape: s32[3,16,1], index: 5, kind: input, shape index: {}]   ;;  %s1264_s6 = inlined_call_operand.hbm [shape: f32[3,8], index: 6, kind: output, shape index: {}]  }
   0x1 LB: > { %s999_s22 = sadd.s32 4294967295, %s952_s21   ;;  %p831_p0 = scmp.ge.s32.totalorder %s952_s21, 1  ;;  %s952_s21 = sphi %s993_s21, %s17_s21  }
   0x2   : > { %p258_p1 = scmp.lt.s32.totalorder %s952_s21, 4 }
   0x4   : > { %p259_p2 = pnand %p831_p0, %p258_p1 }
   0x5   : > { %p308_p3 = scmp.lt.s32.totalorder (!%p259_p2), %s999_s22, 2  ;;  %v954_v0 = vmov (!%p259_p2), 0   ;;  %vm342_vm0 = vcmask (!%p259_p2), 261120   ;;  %v367_v38 = vlaneseq (!%p259_p2)  ;;  %vm393_vm9 = vcmask (!%p259_p2), 7168   ;;  %s844_s19 = sshll.u32 (!%p259_p2), %s999_s22, 7 }
   0x6   : > { %262 = sbr.rel (%p259_p2) target bundleno = 579 (0x243), region = 44  ;;  %905 = vset.pattern.permute.xlu1 (!%p259_p2), %v954_v0  ;;  %904 = vset.pattern.permute.xlu0 (!%p259_p2), %v954_v0  ;;  %s1224_s20 = scalar_lea.smem (!%p259_p2), [#allocation2], %s844_s19 }
   0x7   : > { %v368_v42 = vand.u32 (!%p259_p2), 127, %v367_v38  ;;  %s771_s25 = scalar_lea.smem (!%p259_p2), %s1224_s20, 4 [#allocation2]  ;;  %s774_s26 = scalar_lea.smem (!%p259_p2), %s1224_s20, 5 [#allocation2] }
   0x8   : > { %s762_s28 = scalar_lea.smem (!%p259_p2), %s1224_s20, 1 [#allocation2]  ;;  %s780_s8 = scalar_lea.smem (!%p259_p2), %s1224_s20, 7 [#allocation2] }
   0x9   : > { %p890_p4 = scmp.eq.s32.totalorder (!%p259_p2), %s999_s22, 2 }
   0xd   : > { %s309_s23 = scalar_select %p308_p3, %s999_s22, 2 }
   0xf   : > { %s1005_s24 = sshll.u32 %s309_s23, 4  ;;  %s765_s23 = scalar_lea.smem %s1224_s20, 2 [#allocation2] }
  0x10   : > { %s322_s27 = scalar_lea.vmem %s1260_s2, %s1005_s24  ;;  %s312_s30 = scalar_lea.vmem %s1258_s0, %s1005_s24 }
  0x11   : > { %v1015_v1 = vld [vmem:[%s322_s27] sm:$0xff]  ;;  %v1019_v3 = vld [vmem:[%s322_s27 + $0x8] sm:$0xff]  ;;  %s332_s9 = scalar_lea.vmem %s1262_s4, %s1005_s24  ;;  %s317_s12 = scalar_lea.vmem %s1259_s1, %s1005_s24 }
  0x12   : > { %v1017_v2 = vld [vmem:[%s312_s30] sm:$0xff]  ;;  %v456_v4 = vsel %vm342_vm0, %v1015_v1, -inf  ;;  %v1025_v6 = vld [vmem:[%s312_s30 + $0x8] sm:$0xff]  ;;  %v459_v7 = vsel %vm342_vm0, %v1019_v3, -inf  ;;  %s327_s15 = scalar_lea.vmem %s1261_s3, %s1005_s24  ;;  %s337_s18 = scalar_lea.vmem %s1263_s5, %s1005_s24 }
  0x13   : > { %v343_v5 = vsel %vm342_vm0, %v1017_v2, -inf  ;;  %457 = vmax.xlane.f32.xlu1 %v456_v4  ;;  %v346_v8 = vsel %vm342_vm0, %v1025_v6, -inf  ;;  %v1035_v9 = vld [vmem:[%s332_s9 + $0x8] sm:$0xff]  ;;  %v1037_v10 = vld [vmem:[%s332_s9] sm:$0xff]  ;;  %s768_s24 = scalar_lea.smem %s1224_s20, 3 [#allocation2]  ;;  %s777_s30 = scalar_lea.smem %s1224_s20, 6 [#allocation2] }
  0x14   : > { %344 = vmax.xlane.f32.xlu0 %v343_v5  ;;  %v569_v11 = vsel %vm342_vm0, %v1035_v9, -inf  ;;  %v566_v12 = vsel %vm342_vm0, %v1037_v10, -inf  ;;  %v1047_v13 = vld [vmem:[%s317_s12 + $0x8] sm:$0xff]  ;;  %v1054_v14 = vld [vmem:[%s327_s15] sm:$0xff] }
  0x15   : > { %v1056_v15 = vld [vmem:[%s317_s12] sm:$0xff]  ;;  %v1059_v16 = vld [vmem:[%s327_s15 + $0x8] sm:$0xff]  ;;  %vm386_vm7 = vcmp.eq.s32.totalorder %v1047_v13, 31  ;;  %vm419_vm11 = vcmp.ne.s32.totalorder %v1047_v13, 31  ;;  %vm496_vm12 = vcmp.eq.s32.totalorder %v1054_v14, 31  ;;  %vm528_vm14 = vcmp.ne.s32.totalorder %v1054_v14, 31 }
  0x16   : > { %v1067_v17 = vld [vmem:[%s337_s18] sm:$0xff]  ;;  %v1070_v18 = vld [vmem:[%s337_s18 + $0x8] sm:$0xff]  ;;  %vm385_vm8 = vcmp.eq.s32.totalorder %v1056_v15, 31  ;;  %vm418_vm10 = vcmp.ne.s32.totalorder %v1056_v15, 31  ;;  %vm497_vm13 = vcmp.eq.s32.totalorder %v1059_v16, 31  ;;  %vm529_vm15 = vcmp.ne.s32.totalorder %v1059_v16, 31 }
  0x17   : > { %460 = vmax.xlane.f32.xlu1 %v459_v7 }
  0x18   : > { %347 = vmax.xlane.f32.xlu0 %v346_v8 }
  0x1b   : > { %570 = vmax.xlane.f32.xlu1 %v569_v11  ;;  %v956_v11 = vmov 0.0  }
  0x1c   : > { %567 = vmax.xlane.f32.xlu0 %v566_v12  ;;  %v438_v12 = vsel %vm418_vm10, 1.0, %v956_v11 }
  0x2c   : > { %373 = vperm.xlu1 %905, %v1047_v13  }
  0x30   : > { %481 = vperm.xlu1 %905, %v1054_v14  }
  0x32   : > { %370 = vperm.xlu0 %904, %v1056_v15  }
  0x34   : > { %484 = vperm.xlu1 %905, %v1059_v16  }
  0x38   : > { %591 = vperm.xlu1 %905, %v1067_v17  }
  0x3c   : > { %594 = vperm.xlu1 %905, %v1070_v18  }
  0xa0   : > { %v1073_v19 = vpop.xlane.xlu1 %457 }
  0xa1   : > { %v1075_v20 = vpop.xlane.xlu0 %344  ;;  %v462_v21 = vsub.f32 %v1015_v1, %v1073_v19 }
  0xa2   : > { %v349_v22 = vsub.f32 %v1017_v2, %v1075_v20 }
  0xa3   : > { %v464_v23 = vmul.f32 1.442695, %v462_v21  ;;  %v439_v21 = vsel %vm419_vm11, 1.0, %v956_v11 }
  0xa4   : > { %v351_v24 = vmul.f32 1.442695, %v349_v22  ;;  %v1081_v25 = vpop.xlane.xlu1 %460  ;;  %v440_v22 = vsel %vm393_vm9, %v438_v12, 0.0 }
  0xa5   : > { %v1083_v26 = vpop.xlane.xlu0 %347  ;;  %906 = vpow2.f32 %v464_v23  ;;  %v463_v27 = vsub.f32 %v1019_v3, %v1081_v25  ;;  %v441_v23 = vsel %vm393_vm9, %v439_v21, 0.0 }
  0xa6   : > { %v350_v28 = vsub.f32 %v1025_v6, %v1083_v26  ;;  %908 = vpow2.f32 %v351_v24  ;;  %v442_v24 = vadd.f32 %v441_v23, %v440_v22 }
  0xa7   : > { %v466_v29 = vmul.f32 1.442695, %v463_v27 }
  0xa8   : > { %v353_v30 = vmul.f32 1.442695, %v350_v28  ;;  %v1089_v31 = vpop.xlane.xlu1 %570 }
  0xa9   : > { %v1091_v32 = vpop.xlane.xlu0 %567  ;;  %910 = vpow2.f32 %v466_v29  ;;  %v573_v33 = vsub.f32 %v1035_v9, %v1089_v31 }
  0xaa   : > { %v572_v34 = vsub.f32 %v1037_v10, %v1091_v32  ;;  %912 = vpow2.f32 %v353_v30 }
  0xab   : > { %v576_v35 = vmul.f32 1.442695, %v573_v33 }
  0xac   : > { %v574_v36 = vmul.f32 1.442695, %v572_v34  ;;  %v374_v37 = vpop.permute.xlu1 %373  ;;  %v548_v34 = vsel %vm528_vm14, 1.0, %v956_v11 }
  0xad   : > { %914 = vpow2.f32 %v576_v35  ;;  %vm376_vm2 = vcmp.eq.s32.totalorder %v368_v42, %v374_v37  ;;  %v549_v35 = vsel %vm529_vm15, 1.0, %v956_v11 }
  0xae   : > { %916 = vpow2.f32 %v574_v36  ;;  %v378_v58 = vsel %vm376_vm2, %v1025_v6, 0.0  ;;  %v955_v6 = vmov 1.0   ;;  %v550_v36 = vsel %vm393_vm9, %v548_v34, 0.0 }
  0xaf   : > { %v907_v39 = vpop.eup %906  ;;  %v382_v61 = vsel %vm342_vm0, %v378_v58, 0.0  ;;  %v1119_v7 = vsel %vm386_vm7, 0.1, %v955_v6  ;;  %v1137_v27 = vsel %vm496_vm12, 0.1, %v955_v6  ;;  %v551_v37 = vsel %vm393_vm9, %v549_v35, 0.0 }
  0xb0   : > { %v909_v40 = vpop.eup %908  ;;  %v482_v41 = vpop.permute.xlu1 %481  ;;  %v468_v46 = vsel %vm342_vm0, %v907_v39, 0.0  ;;  %v1139_v28 = vsel %vm497_vm13, 0.1, %v955_v6  ;;  %v516_v29 = vsel %vm393_vm9, %v1137_v27, 0.0  ;;  %v552_v38 = vadd.f32 %v551_v37, %v550_v36 }
  0xb1   : > { %v355_v43 = vsel %vm342_vm0, %v909_v40, 0.0  ;;  %v371_v44 = vpop.permute.xlu0 %370  ;;  %vm486_vm3 = vcmp.eq.s32.totalorder %v368_v42, %v482_v41  ;;  %v517_v30 = vsel %vm393_vm9, %v1139_v28, 0.0  ;;  %vm638_vm2 = vcmp.ne.s32.totalorder %v1067_v17, 31 }
  0xb2   : > { %356 = vadd.xlane.f32.xlu1 %v355_v43  ;;  %vm375_vm1 = vcmp.eq.s32.totalorder %v368_v42, %v371_v44  ;;  %v488_v59 = vsel %vm486_vm3, %v1015_v1, 0.0  ;;  %v518_v33 = vadd.f32 %v517_v30, %v516_v29  ;;  %vm639_vm3 = vcmp.ne.s32.totalorder %v1070_v18, 31 }
  0xb3   : > { %v911_v45 = vpop.eup %910  ;;  %v377_v53 = vsel %vm375_vm1, %v1017_v2, 0.0  ;;  %v490_v62 = vsel %vm342_vm0, %v488_v59, 0.0  ;;  %vm607_vm1 = vcmp.eq.s32.totalorder %v1070_v18, 31  ;;  %v658_v44 = vsel %vm638_vm2, 1.0, %v956_v11 }
  0xb4   : > { %v913_v47 = vpop.eup %912  ;;  %v485_v48 = vpop.permute.xlu1 %484  ;;  %v471_v51 = vsel %vm342_vm0, %v911_v45, 0.0  ;;  %v379_v57 = vsel %vm342_vm0, %v377_v53, 0.0  ;;  %v1159_v40 = vsel %vm607_vm1, 0.1, %v955_v6  ;;  %v659_v45 = vsel %vm639_vm3, 1.0, %v956_v11 }
  0xb5   : > { %v358_v49 = vsel %vm342_vm0, %v913_v47, 0.0  ;;  %vm487_vm4 = vcmp.eq.s32.totalorder %v368_v42, %v485_v48  ;;  %v661_v47 = vsel %vm393_vm9, %v659_v45, 0.0 }
  0xb6   : > { %469 = vadd.xlane.f32.xlu1 %v468_v46  ;;  %359 = vadd.xlane.f32.xlu0 %v358_v49  ;;  %v489_v63 = vsel %vm487_vm4, %v1019_v3, 0.0  ;;  %v1117_v3 = vsel %vm385_vm8, 0.1, %v955_v6  ;;  %v660_v46 = vsel %vm393_vm9, %v658_v44, 0.0 }
  0xb7   : > { %v915_v50 = vpop.eup %914  ;;  %v493_v2 = vsel %vm342_vm0, %v489_v63, 0.0  ;;  %v406_v8 = vsel %vm393_vm9, %v1117_v3, 0.0  ;;  %v662_v48 = vadd.f32 %v661_v47, %v660_v46 }
  0xb8   : > { %v917_v52 = vpop.eup %916  ;;  %v592_v55 = vpop.permute.xlu1 %591  ;;  %v581_v56 = vsel %vm342_vm0, %v915_v50, 0.0 }
  0xb9   : > { %v578_v54 = vsel %vm342_vm0, %v917_v52, 0.0  ;;  %vm596_vm5 = vcmp.eq.s32.totalorder %v368_v42, %v592_v55 }
  0xba   : > { %472 = vadd.xlane.f32.xlu1 %v471_v51  ;;  %579 = vadd.xlane.f32.xlu0 %v578_v54  ;;  %v598_v0 = vsel %vm596_vm5, %v1037_v10, 0.0  ;;  %v407_v10 = vsel %vm393_vm9, %v1119_v7, 0.0 }
  0xbb   : > { %v600_v4 = vsel %vm342_vm0, %v598_v0, 0.0 }
  0xbc   : > { %v595_v60 = vpop.permute.xlu1 %594 }
  0xbd   : > { %vm597_vm6 = vcmp.eq.s32.totalorder %v368_v42, %v595_v60  ;;  %v627_v42 = vsel %vm393_vm9, %v1159_v40, 0.0 }
  0xbe   : > { %582 = vadd.xlane.f32.xlu1 %v581_v56  ;;  %380 = vadd.xlane.f32.xlu0 %v379_v57  ;;  %v599_v1 = vsel %vm597_vm6, %v1035_v9, 0.0  ;;  %v408_v9 = vadd.f32 %v407_v10, %v406_v8 }
  0xbf   : > { %v603_v5 = vsel %vm342_vm0, %v599_v1, 0.0  ;;  %vm606_vm0 = vcmp.eq.s32.totalorder %v1067_v17, 31 }
  0xc0   : > { %v1157_v39 = vsel %vm606_vm0, 0.1, %v955_v6 }
  0xc1   : > { %v626_v41 = vsel %vm393_vm9, %v1157_v39, 0.0 }
  0xc2   : > { %383 = vadd.xlane.f32.xlu1 %v382_v61  ;;  %491 = vadd.xlane.f32.xlu0 %v490_v62  ;;  %v628_v43 = vadd.f32 %v627_v42, %v626_v41 }
  0xc6   : > { %494 = vadd.xlane.f32.xlu1 %v493_v2  ;;  %601 = vadd.xlane.f32.xlu0 %v600_v4 }
  0xca   : > { %604 = vadd.xlane.f32.xlu1 %v603_v5 }
  0xce   : > { %409 = vadd.xlane.f32.xlu1 %v408_v9 }
  0xd2   : > { %443 = vadd.xlane.f32.xlu1 %v442_v24 }
  0xd6   : > { %519 = vadd.xlane.f32.xlu1 %v518_v33 }
  0xda   : > { %553 = vadd.xlane.f32.xlu1 %v552_v38 }
  0xde   : > { %629 = vadd.xlane.f32.xlu1 %v628_v43 }
  0xe2   : > { %663 = vadd.xlane.f32.xlu1 %v662_v48 }
 0x13f   : > { %v357_v49 = vpop.xlane.xlu1 %356 }
 0x140   : > { %918 = vlog2.f32 %v357_v49 }
 0x143   : > { %v470_v50 = vpop.xlane.xlu1 %469  ;;  %v360_v51 = vpop.xlane.xlu0 %359 }
 0x144   : > { %920 = vlog2.f32 %v470_v50 }
 0x145   : > { %922 = vlog2.f32 %v360_v51 }
 0x147   : > { %v473_v52 = vpop.xlane.xlu1 %472  ;;  %v580_v53 = vpop.xlane.xlu0 %579 }
 0x148   : > { %924 = vlog2.f32 %v473_v52 }
 0x149   : > { %926 = vlog2.f32 %v580_v53 }
 0x14a   : > { %v919_v54 = vpop.eup %918 }
 0x14b   : > { %v362_v55 = vmul.f32 0.6931472, %v919_v54  ;;  %v583_v56 = vpop.xlane.xlu1 %582  ;;  %v381_v57 = vpop.xlane.xlu0 %380 }
 0x14c   : > { %928 = vlog2.f32 %v583_v56  ;;  %vm420_vm4 = vcmp.ge.f32.partialorder %v381_v57, %v1075_v20 }
 0x14d   : > { %vm422_vm5 = vmand %vm418_vm10, %vm420_vm4  ;;  %v365_v59 = vadd.f32 %v362_v55, %v1075_v20 }
 0x14e   : > { %v921_v58 = vpop.eup %920  ;;  %v424_v2 = vsel %vm422_vm5, 1.0, %v956_v11 }
 0x14f   : > { %v923_v60 = vpop.eup %922  ;;  %v475_v61 = vmul.f32 0.6931472, %v921_v58  ;;  %v384_v62 = vpop.xlane.xlu1 %383  ;;  %v389_v15 = vsub.f32 %v365_v59, %v381_v57  ;;  %v426_v9 = vsel %vm393_vm9, %v424_v2, 0.0 }
 0x150   : > { %v492_v63 = vpop.xlane.xlu0 %491  ;;  %v364_v0 = vmul.f32 0.6931472, %v923_v60  ;;  %vm421_vm6 = vcmp.ge.f32.partialorder %v384_v62, %v1083_v26 }
 0x151   : > { %vm530_vm7 = vcmp.ge.f32.partialorder %v492_v63, %v1073_v19  ;;  %vm423_vm8 = vmand %vm419_vm11, %vm421_vm6  ;;  %v478_v8 = vadd.f32 %v475_v61, %v1073_v19  ;;  %v391_v16 = vmul.f32 %v389_v15, %v1117_v3 }
 0x152   : > { %v925_v4 = vpop.eup %924  ;;  %v366_v1 = vadd.f32 %v364_v0, %v1083_v26  ;;  %vm532_vm10 = vmand %vm528_vm14, %vm530_vm7  ;;  %v425_v20 = vsel %vm423_vm8, 1.0, %v956_v11 }
 0x153   : > { %v927_v5 = vpop.eup %926  ;;  %v477_v6 = vmul.f32 0.6931472, %v925_v4  ;;  %v495_v10 = vpop.xlane.xlu1 %494  ;;  %v427_v12 = vsel %vm393_vm9, %v425_v20, 0.0  ;;  %v534_v26 = vsel %vm532_vm10, 1.0, %v956_v11  ;;  %v500_v35 = vsub.f32 %v478_v8, %v492_v63 }
 0x154   : > { %v585_v13 = vmul.f32 0.6931472, %v927_v5  ;;  %v390_v21 = vsub.f32 %v366_v1, %v384_v62  ;;  %vm531_vm11 = vcmp.ge.f32.partialorder %v495_v10, %v1081_v25  ;;  %v428_v22 = vadd.f32 %v427_v12, %v426_v9  ;;  %v602_v42 = vpop.xlane.xlu0 %601 }
 0x155   : > { %v479_v14 = vadd.f32 %v477_v6, %v1081_v25  ;;  %vm533_vm12 = vmand %vm529_vm15, %vm531_vm11  ;;  %v536_v33 = vsel %vm393_vm9, %v534_v26, 0.0  ;;  %v394_v45 = vsel %vm393_vm9, %v391_v16, 0.0  ;;  %v502_v46 = vmul.f32 %v500_v35, %v1137_v27 }
 0x156   : > { %v929_v23 = vpop.eup %928  ;;  %v535_v19 = vsel %vm533_vm12, 1.0, %v956_v11  ;;  %v392_v24 = vmul.f32 %v390_v21, %v1119_v7  ;;  %429 = vadd.xlane.f32.xlu0 %v428_v22  ;;  %v588_v36 = vadd.f32 %v585_v13, %v1091_v32  ;;  %vm640_vm14 = vcmp.ge.f32.partialorder %v602_v42, %v1091_v32 }
 0x157   : > { %v587_v29 = vmul.f32 0.6931472, %v929_v23  ;;  %v501_v30 = vsub.f32 %v479_v14, %v495_v10  ;;  %v537_v34 = vsel %vm393_vm9, %v535_v19, 0.0  ;;  %v605_v38 = vpop.xlane.xlu1 %604  ;;  %vm642_vm0 = vmand %vm638_vm2, %vm640_vm14 }
 0x158   : > { %v538_v25 = vadd.f32 %v537_v34, %v536_v33  ;;  %v395_v41 = vsel %vm393_vm9, %v392_v24, 0.0  ;;  %v610_v44 = vsub.f32 %v588_v36, %v602_v42  ;;  %vm641_vm13 = vcmp.ge.f32.partialorder %v605_v38, %v1089_v31 }
 0x159   : > { %v589_v37 = vadd.f32 %v587_v29, %v1089_v31  ;;  %v503_v7 = vmul.f32 %v501_v30, %v1139_v28  ;;  %v396_v47 = vadd.f32 %v395_v41, %v394_v45  ;;  %vm643_vm15 = vmand %vm639_vm3, %vm641_vm13  ;;  %v504_v28 = vsel %vm393_vm9, %v502_v46, 0.0 }
 0x15a   : > { %539 = vadd.xlane.f32.xlu0 %v538_v25  ;;  %v612_v49 = vmul.f32 %v610_v44, %v1157_v39  ;;  %v645_v27 = vsel %vm643_vm15, 1.0, %v956_v11  ;;  %v644_v51 = vsel %vm642_vm0, 1.0, %v956_v11 }
 0x15b   : > { %v611_v43 = vsub.f32 %v589_v37, %v605_v38  ;;  %v505_v3 = vsel %vm393_vm9, %v503_v7, 0.0  ;;  %v647_v18 = vsel %vm393_vm9, %v645_v27, 0.0  ;;  %v646_v52 = vsel %vm393_vm9, %v644_v51, 0.0  ;;  %v410_v53 = vpop.xlane.xlu1 %409 }
 0x15c   : > { %v506_v50 = vadd.f32 %v505_v3, %v504_v28  ;;  %v648_v39 = vadd.f32 %v647_v18, %v646_v52  ;;  %v411_v56 = vrot.slane %v410_v53, 4 }
 0x15d   : > { %v613_v48 = vmul.f32 %v611_v43, %v1159_v40  ;;  %v614_v40 = vsel %vm393_vm9, %v612_v49, 0.0 }
 0x15e   : > { %397 = vadd.xlane.f32.xlu0 %v396_v47  ;;  %v412_v60 = vadd.f32 %v411_v56, %v410_v53 }
 0x15f   : > { %v615_v31 = vsel %vm393_vm9, %v613_v48, 0.0  ;;  %v444_v17 = vpop.xlane.xlu1 %443 }
 0x160   : > { %v616_v32 = vadd.f32 %v615_v31, %v614_v40  ;;  %v445_v59 = vrot.slane %v444_v17, 4  ;;  %v413_v15 = vrot.slane %v412_v60, 2 }
 0x162   : > { %507 = vadd.xlane.f32.xlu0 %v506_v50  ;;  %v446_v2 = vadd.f32 %v445_v59, %v444_v17  ;;  %v414_v26 = vadd.f32 %v413_v15, %v412_v60 }
 0x163   : > { %v520_v54 = vpop.xlane.xlu1 %519 }
 0x164   : > { %v521_v63 = vrot.slane %v520_v54, 4  ;;  %v447_v12 = vrot.slane %v446_v2, 2  ;;  %v415_v16 = vrot.slane %v414_v26, 1 }
 0x166   : > { %617 = vadd.xlane.f32.xlu0 %v616_v32  ;;  %v522_v20 = vadd.f32 %v521_v63, %v520_v54  ;;  %v448_v35 = vadd.f32 %v447_v12, %v446_v2  ;;  %v416_v49 = vadd.f32 %v415_v16, %v414_v26 }
 0x167   : > { %v554_v55 = vpop.xlane.xlu1 %553 }
 0x168   : > { %v555_v4 = vrot.slane %v554_v55, 4  ;;  %v523_v14 = vrot.slane %v522_v20, 2  ;;  %v449_v47 = vrot.slane %v448_v35, 1 }
 0x16a   : > { %649 = vadd.xlane.f32.xlu0 %v648_v39  ;;  %v556_v13 = vadd.f32 %v555_v4, %v554_v55  ;;  %v524_v42 = vadd.f32 %v523_v14, %v522_v20  ;;  %v450_v17 = vadd.f32 %v449_v47, %v448_v35 }
 0x16b   : > { %v630_v61 = vpop.xlane.xlu1 %629 }
 0x16c   : > { %v631_v6 = vrot.slane %v630_v61, 4  ;;  %v557_v34 = vrot.slane %v556_v13, 2  ;;  %v525_v32 = vrot.slane %v524_v42, 1 }
 0x16e   : > { %v632_v22 = vadd.f32 %v631_v6, %v630_v61  ;;  %v558_v3 = vadd.f32 %v557_v34, %v556_v13  ;;  %v526_v59 = vadd.f32 %v525_v32, %v524_v42 }
 0x16f   : > { %v664_v9 = vpop.xlane.xlu1 %663 }
 0x170   : > { %v665_v19 = vrot.slane %v664_v9, 4  ;;  %v633_v37 = vrot.slane %v632_v22, 2  ;;  %v559_v54 = vrot.slane %v558_v3, 1 }
 0x172   : > { %v666_v38 = vadd.f32 %v665_v19, %v664_v9  ;;  %v634_v51 = vadd.f32 %v633_v37, %v632_v22 }
 0x174   : > { %v667_v31 = vrot.slane %v666_v38, 2  ;;  %v635_v60 = vrot.slane %v634_v51, 1 }
 0x176   : > { %v636_v4 = vadd.f32 %v635_v60, %v634_v51 }
 0x1e3   : > { %v430_v57 = vpop.xlane.xlu0 %429 }
 0x1e4   : > { %v431_v58 = vrot.slane %v430_v57, 4 }
 0x1e6   : > { %v432_v62 = vadd.f32 %v431_v58, %v430_v57  ;;  %v668_v58 = vadd.f32 %v667_v31, %v666_v38 }
 0x1e7   : > { %v540_v11 = vpop.xlane.xlu0 %539 }
 0x1e8   : > { %v541_v0 = vrot.slane %v540_v11, 4  ;;  %v433_v1 = vrot.slane %v432_v62, 2  ;;  %v669_v15 = vrot.slane %v668_v58, 1 }
 0x1ea   : > { %v542_v8 = vadd.f32 %v541_v0, %v540_v11  ;;  %v434_v24 = vadd.f32 %v433_v1, %v432_v62  ;;  %v560_v11 = vadd.f32 %v559_v54, %v558_v3 }
 0x1eb   : > { %v398_v5 = vpop.xlane.xlu0 %397 }
 0x1ec   : > { %v399_v10 = vrot.slane %v398_v5, 4  ;;  %v543_v29 = vrot.slane %v542_v8, 2  ;;  %v435_v7 = vrot.slane %v434_v24, 1 }
 0x1ee   : > { %v400_v21 = vadd.f32 %v399_v10, %v398_v5  ;;  %v544_v46 = vadd.f32 %v543_v29, %v542_v8  ;;  %v436_v40 = vadd.f32 %v435_v7, %v434_v24  ;;  %v670_v5 = vadd.f32 %v669_v15, %v668_v58 }
 0x1ef   : > { %v508_v23 = vpop.xlane.xlu0 %507 }
 0x1f0   : > { %v401_v30 = vrot.slane %v400_v21, 2  ;;  %v509_v33 = vrot.slane %v508_v23, 4  ;;  %v545_v53 = vrot.slane %v544_v46, 1 }
 0x1f2   : > { %v510_v36 = vadd.f32 %v509_v33, %v508_v23  ;;  %v402_v25 = vadd.f32 %v401_v30, %v400_v21  ;;  %v546_v62 = vadd.f32 %v545_v53, %v544_v46 }
 0x1f3   : > { %v618_v41 = vpop.xlane.xlu0 %617 }
 0x1f4   : > { %v511_v43 = vrot.slane %v510_v36, 2  ;;  %v619_v44 = vrot.slane %v618_v41, 4  ;;  %v403_v45 = vrot.slane %v402_v25, 1 }
 0x1f6   : > { %v620_v48 = vadd.f32 %v619_v44, %v618_v41  ;;  %v404_v28 = vadd.f32 %v403_v45, %v402_v25  ;;  %v512_v50 = vadd.f32 %v511_v43, %v510_v36 }
 0x1f7   : > { %v650_v27 = vpop.xlane.xlu0 %649 }
 0x1f8   : > { %v621_v18 = vrot.slane %v620_v48, 2  ;;  %v651_v52 = vrot.slane %v650_v27, 4  ;;  %862 = vpush %v404_v28  ;;  %v513_v39 = vrot.slane %v512_v50, 1 }
 0x1f9   : > { %864 = vpush %v416_v49 }
 0x1fa   : > { %v652_v55 = vadd.f32 %v651_v52, %v650_v27  ;;  %866 = vpush %v436_v40  ;;  %v514_v56 = vadd.f32 %v513_v39, %v512_v50  ;;  %v622_v57 = vadd.f32 %v621_v18, %v620_v48 }
 0x1fb   : > { %868 = vpush %v450_v17 }
 0x1fc   : > { %v653_v61 = vrot.slane %v652_v55, 2  ;;  %870 = vpush %v514_v56  ;;  %v623_v63 = vrot.slane %v622_v57, 1 }
 0x1fd   : > { %872 = vpush %v526_v59 }
 0x1fe   : > { %v654_v0 = vadd.f32 %v653_v61, %v652_v55  ;;  %874 = vpush %v546_v62  ;;  %v624_v2 = vadd.f32 %v623_v63, %v622_v57 }
 0x1ff   : > { %876 = vpush %v560_v11 }
 0x200   : > { %878 = vpush %v624_v2  ;;  %v655_v1 = vrot.slane %v654_v0, 1 }
 0x201   : > { %880 = vpush %v636_v4 }
 0x202   : > { %v656_v20 = vadd.f32 %v655_v1, %v654_v0 }
 0x204   : > { %882 = vpush %v656_v20 }
 0x205   : > { %884 = vpush %v670_v5 }
 0x229   : > { %s863_s27 = spop %862 }
 0x22a   : > { %s865_s29 = spop %864 }
 0x22b   : > { %s867_s7 = spop %866 }
 0x22c   : > { %684 = sst [smem:[%s765_s23]] %s867_s7  ;;  %s869_s9 = spop %868 }
 0x22d   : > { %687 = sst [smem:[%s768_s24]] %s869_s9  ;;  %s871_s10 = spop %870 }
 0x22e   : > { %s672_s11 = sadd.f32 %s871_s10, %s863_s27  ;;  %s873_s12 = spop %872 }
 0x22f   : > { %s677_s13 = sadd.f32 %s873_s12, %s865_s29  ;;  %s875_s14 = spop %874 }
 0x230   : > { %690 = sst [smem:[%s771_s25]] %s875_s14  ;;  %s877_s15 = spop %876 }
 0x231   : > { %693 = sst [smem:[%s774_s26]] %s877_s15  ;;  %s879_s16 = spop %878 }
 0x232   : > { %s673_s17 = sadd.f32 %s879_s16, %s672_s11  ;;  %s881_s18 = spop %880 }
 0x233   : > { %s678_s19 = sadd.f32 %s881_s18, %s677_s13  ;;  %s930_s29 = scalar_lea.hbm %s1264_s6, 64 }
 0x234   : > { %676 = sst [smem:[%s1224_s20]] %s673_s17  ;;  %p931_p5 = scmp.ne.s32.totalorder %s1264_s6, %s930_s29 }
 0x235   : > { %681 = sst [smem:[%s762_s28]] %s678_s19  ;;  %s883_s23 = spop %882 }
 0x236   : > { %696 = sst [smem:[%s777_s30]] %s883_s23  ;;  %s885_s7 = spop %884 }
 0x237   : > { %699 = sst [smem:[%s780_s8]] %s885_s7  ;;  %p932_p6 = pnand %p931_p5, %p890_p4 }
 0x238   : > { %p936_p8 = scmp.lt.u32.totalorder %s930_s29, %s1264_s6 }
 0x239   : > { %p933_p7 = pneg %p932_p6 }
 0x23b   : > { %p938_p9 = pnand %p936_p8, %p933_p7 }
 0x23d   : > { %941 = shalt.err (!%p938_p9)
}
 0x23e   : > { %s957_s20 = smov [#allocation2]  }
 0x23f   : > { %887 = dma.smem_to_hbm (%p890_p4), %s957_s20, 64, %s1264_s6, [#allocation3]  }
 0x240   : > { %947 = dma.done.wait (%p890_p4), [#allocation3], 64  }
 0x241   : > { %949 = vsyncadd (%p890_p4), [#allocation3], 4294967232 }
 0x242   : > { %713 = sfence }
 0x243 PF: > { %s17_s21 = sadd.s32 1, %s952_s21  }
 0x244   : > { %p14_p10 = scmp.ge.s32.totalorder %s17_s21, 5  }
 0x246   :  { %16 = sbr.rel (!%p14_p10) target bundleno = 1 (0x1), region = 94 }
 0x24d   :  { %719 = vsyncpa [#allocation3], 1 }
 0x24e   :  { %721 = vsyncpa [#allocation3 + $0x1], 1 }

</bundles_post_ra>
